<compile_context>
chip_gen: v7x
topology: tpu7x:2x2x1
jax: 0.10.0
libtpu: 0.0.40
codegen_flags: <defaults>
</compile_context>

<pallas_src>
import functools

import numpy as np
import jax
import jax.numpy as jnp
from jax import lax
from jax.experimental import pallas as pl
from jax.experimental.pallas import tpu as pltpu


# ----------------------------------------------------------------------------
# Deterministic parameter construction (mirror of models/stft.py::init_kernels)
# ----------------------------------------------------------------------------
def _hamming_periodic(n):
    # scipy.signal.get_window('hamming', n, fftbins=True)
    return 0.54 - 0.46 * np.cos(2.0 * np.pi * np.arange(n) / n)


def init_kernels(win_len, win_inc, fft_len, win_type='hamming', invers=False):
    if win_type is None or win_type == 'None':
        window = np.ones(win_len)
    else:
        assert win_type == 'hamming', "only hamming / None windows supported in-script"
        window = _hamming_periodic(win_len)
    N = fft_len
    fourier_basis = np.fft.rfft(np.eye(N))[:win_len]            # (win_len, N//2+1) complex
    real_kernel = np.real(fourier_basis)
    imag_kernel = np.imag(fourier_basis)
    kernel = np.concatenate([real_kernel, imag_kernel], 1).T    # (N+2, win_len)
    if invers:
        kernel = np.linalg.pinv(kernel).T                       # (N+2, win_len)
    kernel = kernel * window
    kernel = kernel[:, None, :]                                 # (N+2, 1, win_len)
    return kernel.astype(np.float32), window[None, :, None].astype(np.float32)


# ----------------------------------------------------------------------------
# Kernel bodies
# ----------------------------------------------------------------------------
def _overlap_add(frames, n_rows, S, R):
    # frames: (>= n_rows + R - 1, R*S) f32 consecutive synthesis frames.
    # out[r, s] = sum_q frames[r + q, (R-1-q)*S + s]   (shift on sublane axis)
    acc = frames[0:n_rows, (R - 1) * S:R * S]
    for q in range(1, R):                                        # static unroll, R small
        acc = acc + frames[q:q + n_rows, (R - 1 - q) * S:(R - q) * S]
    return acc


def _istft_kernel_full(x_ref, w_ref, o_ref, *, S, R):
    # x_ref: (1, T, C) bf16   w_ref: (C, WIN) bf16 (norm folded)   o_ref: (1, Mt, S) f32
    T = x_ref.shape[1]
    Mt = T - R + 1
    frames = jnp.dot(x_ref[0], w_ref[...],
                     preferred_element_type=jnp.float32)         # (T, WIN), WIN lane-dense
    o_ref[0] = _overlap_add(frames, Mt, S, R)                    # single lane-dense store


def _istft_kernel_tiled(x_ref, w_ref, o_ref, fr_ref, *, S, R):
    # x_ref : (1, F, C)   bf16  frame tile min(j, n_in-1)
    # w_ref : (C, WIN)    bf16  constant synthesis basis (norm folded)
    # o_ref : (1, F, S)   f32   output tile max(j-1, 0)
    # fr_ref: (2, F, WIN) f32   ping-pong carry of the previous frame tile
    j = pl.program_id(1)
    F = x_ref.shape[1]
    slot = lax.rem(j, 2)

    frames = jnp.dot(x_ref[0], w_ref[...],
                     preferred_element_type=jnp.float32)         # (F, WIN)
    fr_ref[slot] = frames

    @pl.when(j > 0)
    def _():
        # Output rows (j-1)*F + r need frames (j-1)*F + r + q (q < R): the whole
        # previous tile (carry) plus the first R-1 frames of the current tile.
        window = jnp.concatenate([fr_ref[1 - slot], frames[0:R - 1]], axis=0)
        o_ref[0] = _overlap_add(window, F, S, R)


def _vmem_limit(need_bytes):
    return int(min(max(32 * 1024 * 1024, 2 * need_bytes), 100 * 1024 * 1024))


# ----------------------------------------------------------------------------
# Module wrapper
# ----------------------------------------------------------------------------
class ConviSTFTPallas:
    def __init__(self, win_len, win_inc, fft_len=None, win_type='hamming',
                 feature_type='real', fix=True, frames_per_block=256):
        if fft_len is None:
            fft_len = int(2 ** np.ceil(np.log2(win_len)))
        self.fft_len = fft_len
        self.win_len = win_len
        self.stride = win_inc
        self.feature_type = feature_type
        self.frames_per_block = frames_per_block
        # Interior overlap-add requires win_len % stride == 0 and win_len > stride.
        assert win_len % win_inc == 0 and win_len > win_inc

        S = win_inc
        R = win_len // win_inc
        kernel, window = init_kernels(win_len, win_inc, fft_len, win_type, invers=True)
        W = kernel[:, 0, :].astype(np.float64)                   # (C, WIN)

        # Interior window-power normalization depends only on the intra-hop
        # index s; fold its reciprocal into the synthesis basis (f64 -> bf16).
        win2 = window[0, :, 0].astype(np.float64) ** 2           # (WIN,)
        coff_int = win2.reshape(R, S).sum(axis=0)                # (S,)
        inv = 1.0 / (coff_int + 1e-8)
        W_norm = W * np.tile(inv, R)[None, :]                    # col k scaled by inv[k % S]
        self.w = jnp.asarray(W_norm.astype(np.float32), dtype=jnp.bfloat16)  # (C, WIN)

        self.weight = jnp.asarray(kernel)                        # parity / reference only
        self.window = jnp.asarray(window[0, :, 0])

    def __call__(self, inputs, phase=None):
        # inputs: [B, fft_len+2, T] complex spec (or [B, fft_len//2+1, T] mags + phase)
        if phase is not None:
            real = inputs * jnp.cos(phase)
            imag = inputs * jnp.sin(phase)
            inputs = jnp.concatenate([real, imag], axis=1)

        B, C, T = inputs.shape
        assert C == self.fft_len + 2
        S = self.stride
        R = self.win_len // S
        WIN = self.win_len
        Mt = T - R + 1
        assert Mt >= 1

        # bf16 [B, T, C] slab: one fused transpose+cast pass; the kernel's
        # dominant HBM stream is then bf16 and lane-dense for the MXU.
        xt = jnp.swapaxes(inputs, 1, 2).astype(jnp.bfloat16)     # (B, T, C)

        if Mt <= self.frames_per_block:
            out = self._call_full(xt, B, C, T, Mt, S, R, WIN)
        else:
            out = self._call_tiled(xt, B, C, T, Mt, S, R, WIN)

        # (B, Mt, S) is already the trimmed signal in row-major order -> free reshape.
        return out.reshape(B, 1, Mt * S)                         # torch NCL output

    # -- single-block path (short utterances, all blocks full-dim) -------------
    def _call_full(self, xt, B, C, T, Mt, S, R, WIN):
        vmem_need = (2 * T * C * 2 + 2 * C * WIN * 2 + 2 * Mt * S * 4
                     + 3 * T * WIN * 4)
        kernel_fn = functools.partial(_istft_kernel_full, S=S, R=R)
        return pl.pallas_call(
            kernel_fn,
            out_shape=jax.ShapeDtypeStruct((B, Mt, S), jnp.float32),
            grid_spec=pltpu.PrefetchScalarGridSpec(
                num_scalar_prefetch=0,
                grid=(B,),
                in_specs=[
                    pl.BlockSpec((1, T, C), lambda b: (b, 0, 0)),
                    pl.BlockSpec((C, WIN), lambda b: (0, 0)),
                ],
                out_specs=pl.BlockSpec((1, Mt, S), lambda b: (b, 0, 0)),
            ),
            compiler_params=pltpu.CompilerParams(
                dimension_semantics=("parallel",),
                vmem_limit_bytes=_vmem_limit(vmem_need)),
            cost_estimate=pl.CostEstimate(
                flops=2 * B * T * C * WIN, transcendentals=0,
                bytes_accessed=B * (T * C * 2 + Mt * S * 4) + C * WIN * 2),
        )(xt, self.w)

    # -- T-tiled path (long utterances, carried frame tile) --------------------
    def _call_tiled(self, xt, B, C, T, Mt, S, R, WIN):
        F = self.frames_per_block
        assert F >= R - 1
        nJ = pl.cdiv(Mt, F)                                      # output tiles
        n_in = pl.cdiv(T, F)                                     # input frame tiles
        vmem_need = (2 * F * C * 2 + 2 * C * WIN * 2 + 2 * F * S * 4
                     + 2 * F * WIN * 4 + 3 * F * WIN * 4)
        kernel_fn = functools.partial(_istft_kernel_tiled, S=S, R=R)
        return pl.pallas_call(
            kernel_fn,
            out_shape=jax.ShapeDtypeStruct((B, Mt, S), jnp.float32),
            grid_spec=pltpu.PrefetchScalarGridSpec(
                num_scalar_prefetch=0,
                grid=(B, nJ + 1),
                in_specs=[
                    pl.BlockSpec((1, F, C),
                                 lambda b, j: (b, jnp.minimum(j, n_in - 1), 0)),
                    pl.BlockSpec((C, WIN), lambda b, j: (0, 0)),
                ],
                out_specs=pl.BlockSpec((1, F, S),
                                       lambda b, j: (b, jnp.maximum(j - 1, 0), 0)),
                scratch_shapes=[pltpu.VMEM((2, F, WIN), jnp.float32)],
            ),
            compiler_params=pltpu.CompilerParams(
                dimension_semantics=("parallel", "arbitrary"),
                vmem_limit_bytes=_vmem_limit(vmem_need)),
            cost_estimate=pl.CostEstimate(
                flops=2 * B * (nJ + 1) * F * C * WIN, transcendentals=0,
                bytes_accessed=B * (T * C * 2 + Mt * S * 4) + C * WIN * 2),
        )(xt, self.w)


# ----------------------------------------------------------------------------
# References
# ----------------------------------------------------------------------------
def _reference_forward(x, weight, window, win_len, stride):
    # Exact torch ConviSTFT.forward semantics (conv_transpose1d + coff div + trim), f64.
    B, C, T = x.shape
    W = weight[:, 0, :].astype(np.float64)                       # (C, win_len)
    win2 = (window[0, :, 0].astype(np.float64)) ** 2
    L = (T - 1) * stride + win_len
    out = np.zeros((B, L), np.float64)
    coff = np.zeros(L, np.float64)
    for t in range(T):
        coff[t * stride:t * stride + win_len] += win2
        frame = x[:, :, t].astype(np.float64) @ W                # (B, win_len)
        out[:, t * stride:t * stride + win_len] += frame
    out = out / (coff[None, :] + 1e-08)
    out = out[:, win_len - stride: -(win_len - stride)]
    return out[:, None, :]


def _reference_folded(x_bct, w_norm, S, R):
    # Emulates the kernel's math (bf16-rounded operands, folded norm), f64 accumulation.
    B, C, T = x_bct.shape
    Mt = T - R + 1
    frames = np.einsum('bct,cw->btw', x_bct, w_norm)             # (B, T, WIN)
    out = np.zeros((B, Mt, S), np.float64)
    for q in range(R):
        out += frames[:, q:q + Mt, (R - 1 - q) * S:(R - q) * S]
    return out.reshape(B, 1, Mt * S)


def _run_case(name, win_len, win_inc, fft_len, B, T, key):
    model = ConviSTFTPallas(win_len, win_inc, fft_len, win_type='hamming')
    C = fft_len + 2
    x = jax.random.normal(key, (B, C, T), dtype=jnp.float32)     # [B, N+2, T] complex spec

    y = jax.block_until_ready(model(x))
    y_np = np.asarray(y, dtype=np.float64)

    S, R = win_inc, win_len // win_inc
    Mt = T - R + 1
    assert y.shape == (B, 1, Mt * S), (name, y.shape)

    # (1) exact-path check: same bf16-rounded operands, f64 accumulation.
    x_bf = np.asarray(jnp.asarray(x).astype(jnp.bfloat16).astype(jnp.float32),
                      dtype=np.float64)
    w_bf = np.asarray(jnp.asarray(model.w).astype(jnp.float32), dtype=np.float64)
    y_folded = _reference_folded(x_bf, w_bf, S, R)
    np.testing.assert_allclose(y_np, y_folded, rtol=2e-3, atol=1e-4)

    # (2) true f32 torch-semantics reference: loose relative-L2 (bf16 operand error).
    kernel_np, window_np = init_kernels(win_len, win_inc, fft_len, 'hamming', invers=True)
    y_f32 = _reference_forward(np.asarray(x, np.float64), kernel_np, window_np,
                               win_len, win_inc)
    rel = np.linalg.norm(y_np - y_f32) / (np.linalg.norm(y_f32) + 1e-12)
    assert rel < 3e-2, (name, rel)


if __name__ == "__main__":
    key = jax.random.PRNGKey(0)
    k1, k2 = jax.random.split(key)
    # Tiled path: win 256 / hop 128 (R=2), T=768 frames -> grid (B, 4), F=256.
    _run_case("tiled", win_len=256, win_inc=128, fft_len=256, B=2, T=768, key=k1)
    # Single-block path: win 32 / hop 8 (R=4), small T, full-dim blocks.
    _run_case("full", win_len=32, win_inc=8, fft_len=32, B=2, T=24, key=k2)
    print("KERNEL_OK")
</pallas_src>

<mosaic_0001>
module attributes {stable_mosaic.version = 11 : i64} {
  func.func @_istft_kernel_tiled(%arg0: i32, %arg1: i32, %arg2: memref<1x256x258xbf16, #tpu.memory_space<vmem>>, %arg3: memref<258x256xbf16, #tpu.memory_space<vmem>>, %arg4: memref<1x256x128xf32, #tpu.memory_space<vmem>>, %arg5: memref<2x256x256xf32, #tpu.memory_space<vmem>>) attributes {dimension_semantics = [#tpu.dimension_semantics<parallel>, #tpu.dimension_semantics<arbitrary>], iteration_bounds = array<i64: 2, 4>, scalar_prefetch = 0 : i64, scratch_operands = 1 : i64, tpu.core_type = #tpu.core_type<tc>, window_params = [{transform_indices = @transform_0, window_bounds = array<i64: 1, 256, 258>}, {pipeline_mode = #tpu.pipeline_mode<synchronous>, transform_indices = @transform_1, window_bounds = array<i64: 258, 256>}, {transform_indices = @transform_2, window_bounds = array<i64: 1, 256, 128>}]} {
    %c2_i32 = arith.constant 2 : i32
    %0 = arith.remsi %arg1, %c2_i32 : i32
    %c0 = arith.constant 0 : index
    %c0_0 = arith.constant 0 : index
    %c0_1 = arith.constant 0 : index
    %1 = vector.load %arg2[%c0, %c0_0, %c0_1] : memref<1x256x258xbf16, #tpu.memory_space<vmem>>, vector<1x256x258xbf16>
    %2 = vector.shape_cast %1 : vector<1x256x258xbf16> to vector<256x258xbf16>
    %c0_2 = arith.constant 0 : index
    %c0_3 = arith.constant 0 : index
    %3 = vector.load %arg3[%c0_2, %c0_3] : memref<258x256xbf16, #tpu.memory_space<vmem>>, vector<258x256xbf16>
    %cst = arith.constant dense<0.000000e+00> : vector<256x256xf32>
    %4 = tpu.matmul %2, %3, %cst {dimension_numbers = #tpu.dot_dimension_numbers<[1], [0], [0], [1], [0, 0, 1, 1], [], []>} : vector<256x258xbf16>, vector<258x256xbf16>, vector<256x256xf32> -> vector<256x256xf32>
    %5 = arith.index_cast %0 : i32 to index
    %c0_4 = arith.constant 0 : index
    %c0_5 = arith.constant 0 : index
    %6 = vector.load %arg5[%5, %c0_4, %c0_5] : memref<2x256x256xf32, #tpu.memory_space<vmem>>, vector<1x256x256xf32>
    %7 = vector.shape_cast %6 : vector<1x256x256xf32> to vector<256x256xf32>
    %8 = vector.shape_cast %4 : vector<256x256xf32> to vector<1x256x256xf32>
    tpu.vector_store %arg5[%5, %c0_4, %c0_5], %8 {strides = array<i32>} : memref<2x256x256xf32, #tpu.memory_space<vmem>>, vector<1x256x256xf32>,
    %c0_i32 = arith.constant 0 : i32
    %9 = arith.cmpi sgt, %arg1, %c0_i32 : i32
    %10 = arith.extui %9 : i1 to i32
    %c0_i32_6 = arith.constant 0 : i32
    %11 = arith.cmpi ne, %10, %c0_i32_6 : i32
    scf.if %11 {
      %c1_i32 = arith.constant 1 : i32
      %12 = arith.subi %c1_i32, %0 : i32
      %13 = arith.index_cast %12 : i32 to index
      %c0_7 = arith.constant 0 : index
      %c0_8 = arith.constant 0 : index
      %14 = vector.load %arg5[%13, %c0_7, %c0_8] : memref<2x256x256xf32, #tpu.memory_space<vmem>>, vector<1x256x256xf32>
      %15 = vector.shape_cast %14 : vector<1x256x256xf32> to vector<256x256xf32>
      %16 = vector.extract_strided_slice %4 {offsets = [0, 0], sizes = [1, 256], strides = [1, 1]} : vector<256x256xf32> to vector<1x256xf32>
      %17 = tpu.concatenate %15, %16 in 0 : vector<256x256xf32>, vector<1x256xf32> -> vector<257x256xf32>
      %18 = vector.extract_strided_slice %17 {offsets = [0, 128], sizes = [256, 128], strides = [1, 1]} : vector<257x256xf32> to vector<256x128xf32>
      %19 = vector.extract_strided_slice %17 {offsets = [1, 0], sizes = [256, 128], strides = [1, 1]} : vector<257x256xf32> to vector<256x128xf32>
      %20 = arith.addf %18, %19 : vector<256x128xf32>
      %c0_9 = arith.constant 0 : index
      %c0_10 = arith.constant 0 : index
      %c0_11 = arith.constant 0 : index
      %21 = vector.load %arg4[%c0_9, %c0_10, %c0_11] : memref<1x256x128xf32, #tpu.memory_space<vmem>>, vector<1x256x128xf32>
      %22 = vector.shape_cast %21 : vector<1x256x128xf32> to vector<256x128xf32>
      %23 = vector.shape_cast %20 : vector<256x128xf32> to vector<1x256x128xf32>
      tpu.vector_store %arg4[%c0_9, %c0_10, %c0_11], %23 {strides = array<i32>} : memref<1x256x128xf32, #tpu.memory_space<vmem>>, vector<1x256x128xf32>,
    } else {
    }
    return
  }
  func.func @transform_0(%arg0: i32, %arg1: i32) -> (i32, i32, i32) {
    %c2_i32 = arith.constant 2 : i32
    %0 = arith.minsi %arg1, %c2_i32 : i32
    %c0_i32 = arith.constant 0 : i32
    %c0_i32_0 = arith.constant 0 : i32
    return %arg0, %0, %c0_i32 : i32, i32, i32
  }
  func.func @transform_1(%arg0: i32, %arg1: i32) -> (i32, i32) {
    %c0_i32 = arith.constant 0 : i32
    %c0_i32_0 = arith.constant 0 : i32
    %c0_i32_1 = arith.constant 0 : i32
    return %c0_i32, %c0_i32_0 : i32, i32
  }
  func.func @transform_2(%arg0: i32, %arg1: i32) -> (i32, i32, i32) {
    %c1_i32 = arith.constant 1 : i32
    %0 = arith.subi %arg1, %c1_i32 : i32
    %c0_i32 = arith.constant 0 : i32
    %1 = arith.maxsi %0, %c0_i32 : i32
    %c0_i32_0 = arith.constant 0 : i32
    %c0_i32_1 = arith.constant 0 : i32
    return %arg0, %1, %c0_i32_0 : i32, i32, i32
  }
}

</mosaic_0001>

<bundles_post_ra>
// kernel: tpu_custom_call.1
= control target key start
LH: loop header
LB: loop body
LE: loop exit
PB: predicated region body
PF: predicated region fallthrough
CT: control target
= control target key end

     0   :  { %s2005_s9 = smov 0   ;;  %s2007_s10 = smov 0   ;;  %s2598_s0 = inlined_call_operand.vmem [shape: bf16[2,768,258], index: 0, kind: input, shape index: {}]   ;;  %s2599_s1 = inlined_call_operand.vmem [shape: bf16[258,256], index: 1, kind: input, shape index: {}]   ;;  %s2600_s2 = inlined_call_operand.vmem [shape: f32[2,767,128], index: 2, kind: output, shape index: {}]  }
   0x1   :  { %s2009_s11 = smov 0   ;;  %s2011_s12 = smov 0  }
   0x2   :  { %s2013_s13 = smov 0  }
   0x3 LB: > { %s21_s14 = sadd.s32 1, %s1979_s11  ;;  %s24_s15 = sadd.s32 1, %s1983_s12  ;;  %s1987_s13 = sphi %s2013_s13, %s12_s13   ;;  %s1983_s12 = sphi %s2011_s12, %s2604_s12   ;;  %s1979_s11 = sphi %s2009_s11, %s2603_s11   ;;  %s1975_s10 = sphi %s2007_s10, %s2602_s10   ;;  %s1971_s9 = sphi %s2005_s9, %s2601_s9  }
   0x4   : > { %p22_p0 = scmp.ge.s32.totalorder %s21_s14, 4  ;;  %p1612_p1 = scmp.ge.s32.totalorder %s1987_s13, 1 }
   0x5   : > { %p148_p2 = scmp.lt.s32.totalorder %s1987_s13, 9 }
   0x6   : > { %s2606_s14 = smov (%p22_p0, %s21_s14), 0  ;;  %s2608_s15 = smov (!%p22_p0, %s24_s15), %s1983_s12 }
   0x7   : > { %p149_p3 = pnand %p1612_p1, %p148_p2  ;;  %p26_p4 = scmp.ge.s32.totalorder %s2608_s15, 2 }
   0x8   : > { %v1835_v0 = vld [vmem:[%s2599_s1 + $0x4] ss:$8 sps:$4 sm:$0xff] (!%p149_p3)   ;;  %v1837_v1 = vld [vmem:[%s2599_s1] ss:$8 sps:$4 sm:$0xff] (!%p149_p3)   ;;  %v1989_v2 = vmov (!%p149_p3), 0   ;;  %p184_p5 = scmp.lt.s32.totalorder (!%p149_p3), %s1971_s9, 2 }
   0x9   : > { %s2610_s15 = smov (%p26_p4, %s2608_s15), 0  ;;  %152 = sbr.rel (%p149_p3) target bundleno = 448 (0x1c0), region = 28 }
   0xa   : > { %1005 = vmatprep.mubr.bf16.mxu0 (!%p149_p3), %v1989_v2  ;;  %p187_p6 = scmp.lt.s32.totalorder (!%p149_p3), %s1975_s10, 1  ;;  %780 = vmatprep.subr.bf16.mxu1 (!%p149_p3), %v1835_v0  ;;  %v1838_v3 = vld [vmem:[%s2599_s1 + $0x14] ss:$8 sps:$4 sm:$0xff] (!%p149_p3)   ;;  %s1615_s22 = sadd.s32 (!%p149_p3), 4294967295, %s1971_s9  ;;  %v1840_v4 = vld [vmem:[%s2599_s1 + $0x10] ss:$8 sps:$4 sm:$0xff] (!%p149_p3)  }
   0xb   : > { %781 = vmatpush1.bf16.msra.mxu1 (!%p149_p3), %v1837_v1  ;;  %v1841_v5 = vld [vmem:[%s2599_s1 + $0x24] ss:$8 sps:$4 sm:$0xff] (!%p149_p3)   ;;  %p200_p7 = scmp.gt.s32.totalorder (!%p149_p3), %s1615_s22, 0  ;;  %v1843_v6 = vld [vmem:[%s2599_s1 + $0x20] ss:$8 sps:$4 sm:$0xff] (!%p149_p3)   ;;  %vm773_vm0 = vcmask (!%p149_p3), 1040384  }
   0xc   : > { %782 = vmatprep.subr.bf16.mxu1 (!%p149_p3), %v1838_v3  ;;  %v1844_v7 = vld [vmem:[%s2599_s1 + $0x34] ss:$8 sps:$4 sm:$0xff] (!%p149_p3)   ;;  %v1846_v8 = vld [vmem:[%s2599_s1 + $0x30] ss:$8 sps:$4 sm:$0xff] (!%p149_p3)   ;;  %v1847_v9 = vld [vmem:[%s2599_s1 + $0x44] ss:$8 sps:$4 sm:$0xff] (!%p149_p3)  }
   0xd   : > { %v1849_v10 = vld [vmem:[%s2599_s1 + $0x40] ss:$8 sps:$4 sm:$0xff] (!%p149_p3)   ;;  %v1850_v11 = vld [vmem:[%s2599_s1 + $0x54] ss:$8 sps:$4 sm:$0xff] (!%p149_p3)   ;;  %v1852_v12 = vld [vmem:[%s2599_s1 + $0x50] ss:$8 sps:$4 sm:$0xff] (!%p149_p3)  }
   0xe   : > { %v1853_v13 = vld [vmem:[%s2599_s1 + $0x64] ss:$8 sps:$4 sm:$0xff] (!%p149_p3)   ;;  %v1855_v17 = vld [vmem:[%s2599_s1 + $0x60] ss:$8 sps:$4 sm:$0xff] (!%p149_p3)   ;;  %vm724_vm1 = vcmask (!%p149_p3), 15360   ;;  %s217_s8 = ssub.s32 (!%p149_p3), 0, %s1971_s9 }
   0xf   : > { %783 = vmatpush1.bf16.msra.mxu1 (!%p149_p3), %v1840_v4  ;;  %v318_v14 = vld [vmem:[%s2599_s1 + $0x100] sm:$0x11] (!%p149_p3)  ;;  %v1856_v21 = vld [vmem:[%s2599_s1 + $0x74] ss:$8 sps:$4 sm:$0xff] (!%p149_p3)   ;;  %v1858_v22 = vld [vmem:[%s2599_s1 + $0x70] ss:$8 sps:$4 sm:$0xff] (!%p149_p3)  }
  0x10   : > { %s185_s25 = scalar_select %p184_p5, %s1971_s9, 2  ;;  %784 = vmatprep.subr.bf16.mxu1 %v1841_v5  ;;  %v1700_v15 = vcombine.high %v318_v14, %v318_v14  ;;  %v1699_v16 = vcombine.low %v318_v14, %v318_v14  ;;  %v1859_v23 = vld [vmem:[%s2599_s1 + $0x84] ss:$8 sps:$4 sm:$0xff]   ;;  %v1861_v24 = vld [vmem:[%s2599_s1 + $0x80] ss:$8 sps:$4 sm:$0xff]  }
  0x11   : > { %s2612_s10 = smov (!%p187_p6, %s1975_s10), 1  ;;  %s2616_s22 = smov (!%p200_p7, %s1615_s22), 0  ;;  %v1862_v26 = vld [vmem:[%s2599_s1 + $0x94] ss:$8 sps:$4 sm:$0xff]   ;;  %v1864_v27 = vld [vmem:[%s2599_s1 + $0x90] ss:$8 sps:$4 sm:$0xff]  }
  0x12   : > { %s1613_s28 = sshll.u32 %s185_s25, 5  ;;  %s1792_s3 = smul.u32 288, %s2612_s10  ;;  %1701 = vmatprep.subr.msk.bf16.mxu0 %vm773_vm0, %v1700_v15  ;;  %v775_v18 = vsel %vm773_vm0, %v1699_v16, 0  ;;  %v1865_v28 = vld [vmem:[%s2599_s1 + $0xa4] ss:$8 sps:$4 sm:$0xff]  }
  0x13   : > { %p189_p8 = scmp.lt.s32.totalorder %s1613_s28, 95  ;;  %785 = vmatpush1.bf16.msra.mxu1 %v1843_v6  ;;  %s1616_s16 = sshll.u32 %s2616_s22, 5  ;;  %974 = vmatpush1.bf16.msra.mxu0 %v775_v18  ;;  %v1867_v29 = vld [vmem:[%s2599_s1 + $0xa0] ss:$8 sps:$4 sm:$0xff]   ;;  %v1868_v31 = vld [vmem:[%s2599_s1 + $0xb4] ss:$8 sps:$4 sm:$0xff]  }
  0x14   : > { %786 = vmatprep.subr.bf16.mxu1 %v1844_v7  ;;  %p205_p9 = scmp.lt.s32.totalorder %s1616_s16, 95  ;;  %s1793_s19 = smul.u32 96, %s2612_s10  ;;  %v1870_v32 = vld [vmem:[%s2599_s1 + $0xb0] ss:$8 sps:$4 sm:$0xff]   ;;  %v1871_v33 = vld [vmem:[%s2599_s1 + $0xc4] ss:$8 sps:$4 sm:$0xff]  }
  0x15   : > { %s2614_s28 = smov (!%p189_p8, %s1613_s28), 95  ;;  %v1873_v34 = vld [vmem:[%s2599_s1 + $0xc0] ss:$8 sps:$4 sm:$0xff]   ;;  %v1874_v36 = vld [vmem:[%s2599_s1 + $0xd4] ss:$8 sps:$4 sm:$0xff]   ;;  %p216_p10 = scmp.lt.s32.totalorder %s1971_s9, 0 }
  0x16   : > { %s1791_s6 = smul.u32 3, %s2614_s28  ;;  %s2618_s16 = smov (!%p205_p9, %s1616_s16), 95  ;;  %v1876_v37 = vld [vmem:[%s2599_s1 + $0xd0] ss:$8 sps:$4 sm:$0xff]   ;;  %v1877_v38 = vld [vmem:[%s2599_s1 + $0xe4] ss:$8 sps:$4 sm:$0xff]  }
  0x17   : > { %787 = vmatpush1.bf16.msra.mxu1 %v1846_v8  ;;  %s208_s26 = sadd.s32 %s1793_s19, %s2618_s16  ;;  %v1879_v39 = vld [vmem:[%s2599_s1 + $0xe0] ss:$8 sps:$4 sm:$0xff]   ;;  %v1882_v41 = vld [vmem:[%s2599_s1 + $0xf4] ss:$8 sps:$4 sm:$0xff]   ;;  %v1884_v42 = vld [vmem:[%s2599_s1 + $0xf0] ss:$8 sps:$4 sm:$0xff]   ;;  %s1618_s16 = smin.u32 %s1971_s9, %s217_s8 }
  0x18   : > { %s193_s20 = sadd.s32 %s1792_s3, %s1791_s6  ;;  %788 = vmatprep.subr.bf16.mxu1 %v1847_v9  ;;  %s1617_s27 = sshll.u32 %s208_s26, 3 }
  0x19   : > { %s1614_s22 = sshll.u32 %s193_s20, 2  ;;  %s2083_s5 = scalar_lea.vmem %s2600_s2, %s1617_s27 }
  0x1a   : > { %s2091_s17 = scalar_lea.vmem %s2598_s0, %s1614_s22  ;;  %p1720_p11 = scmp.le.s32.totalorder %s1971_s9, 0 }
  0x1b   : > { %789 = vmatpush1.bf16.msra.mxu1 %v1849_v10  ;;  %v1885_v19 = vld [vmem:[%s2091_s17 + $0x8] ss:$12 sps:$4 sm:$0xff]   ;;  %v1888_v20 = vld [vmem:[%s2091_s17 + $0x4] ss:$12 sps:$4 sm:$0xff]   ;;  %v1889_v25 = vld [vmem:[%s2091_s17 + $0x20] ss:$12 sps:$4 sm:$0xff]  }
  0x1c   : > { %790 = vmatprep.subr.bf16.mxu1 %v1850_v11  ;;  %812 = vmatprep.mubr.bf16.mxu1 %v1888_v20  ;;  %v1893_v30 = vld [vmem:[%s2091_s17 + $0x38] ss:$12 sps:$4 sm:$0xff]   ;;  %v1897_v35 = vld [vmem:[%s2091_s17 + $0x50] ss:$12 sps:$4 sm:$0xff]   ;;  %v1901_v40 = vld [vmem:[%s2091_s17 + $0x68] ss:$12 sps:$4 sm:$0xff]  }
  0x1d   : > { %1702 = vmatmul.mubr.msk.bf16.vlgmr.msra.gmra.mrb[0].mxu0 %vm724_vm1, %v1885_v19  ;;  %v1886_v43 = vld [vmem:[%s2091_s17] ss:$12 sps:$4 sm:$0xff]   ;;  %v1890_v44 = vld [vmem:[%s2091_s17 + $0x1c] ss:$12 sps:$4 sm:$0xff]   ;;  %v1892_v46 = vld [vmem:[%s2091_s17 + $0x18] ss:$12 sps:$4 sm:$0xff]  }
  0x1e   : > { %1015 = vmatprep.mubr.bf16.mxu0 %v1989_v2  ;;  %v1905_v45 = vld [vmem:[%s2091_s17 + $0x80] ss:$12 sps:$4 sm:$0xff]   ;;  %v1909_v48 = vld [vmem:[%s2091_s17 + $0x98] ss:$12 sps:$4 sm:$0xff]   ;;  %v1896_v49 = vld [vmem:[%s2091_s17 + $0x30] ss:$12 sps:$4 sm:$0xff]  }
  0x1f   : > { %791 = vmatpush1.bf16.msra.mxu1 %v1852_v12  ;;  %v1894_v47 = vld [vmem:[%s2091_s17 + $0x34] ss:$12 sps:$4 sm:$0xff]   ;;  %v1898_v50 = vld [vmem:[%s2091_s17 + $0x4c] ss:$12 sps:$4 sm:$0xff]   ;;  %v1913_v51 = vld [vmem:[%s2091_s17 + $0xb0] ss:$12 sps:$4 sm:$0xff]  }
  0x20   : > { %792 = vmatprep.subr.bf16.mxu1 %v1853_v13  ;;  %v1900_v52 = vld [vmem:[%s2091_s17 + $0x48] ss:$12 sps:$4 sm:$0xff]   ;;  %v1902_v53 = vld [vmem:[%s2091_s17 + $0x64] ss:$12 sps:$4 sm:$0xff]   ;;  %v1904_v55 = vld [vmem:[%s2091_s17 + $0x60] ss:$12 sps:$4 sm:$0xff]  }
  0x21   : > { %v1917_v54 = vld [vmem:[%s2091_s17 + $0xc8] ss:$12 sps:$4 sm:$0xff]   ;;  %v1921_v57 = vld [vmem:[%s2091_s17 + $0xe0] ss:$12 sps:$4 sm:$0xff]   ;;  %v1908_v58 = vld [vmem:[%s2091_s17 + $0x78] ss:$12 sps:$4 sm:$0xff]  }
  0x22   : > { %v1906_v56 = vld [vmem:[%s2091_s17 + $0x7c] ss:$12 sps:$4 sm:$0xff]   ;;  %v1910_v59 = vld [vmem:[%s2091_s17 + $0x94] ss:$12 sps:$4 sm:$0xff]   ;;  %v1925_v60 = vld [vmem:[%s2091_s17 + $0xf8] ss:$12 sps:$4 sm:$0xff]  }
  0x23   : > { %793 = vmatpush1.bf16.msra.mxu1 %v1855_v17  ;;  %v1912_v61 = vld [vmem:[%s2091_s17 + $0x90] ss:$12 sps:$4 sm:$0xff]   ;;  %v1914_v62 = vld [vmem:[%s2091_s17 + $0xac] ss:$12 sps:$4 sm:$0xff]   ;;  %v1916_v0 = vld [vmem:[%s2091_s17 + $0xa8] ss:$12 sps:$4 sm:$0xff]  }
  0x24   : > { %794 = vmatprep.subr.bf16.mxu1 %v1856_v21  ;;  %v1929_v63 = vld [vmem:[%s2091_s17 + $0x110] ss:$12 sps:$4 sm:$0xff]   ;;  %v1933_v3 = vld [vmem:[%s2091_s17 + $0x128] ss:$12 sps:$4 sm:$0xff]   ;;  %v1920_v4 = vld [vmem:[%s2091_s17 + $0xc0] ss:$12 sps:$4 sm:$0xff]  }
  0x25   : > { %1703 = vmatmul.mubr.msk.bf16.gmra.mrb[4].mxu0 %vm724_vm1, %v1889_v25  ;;  %v1918_v1 = vld [vmem:[%s2091_s17 + $0xc4] ss:$12 sps:$4 sm:$0xff]   ;;  %v1922_v5 = vld [vmem:[%s2091_s17 + $0xdc] ss:$12 sps:$4 sm:$0xff]   ;;  %v1937_v6 = vld [vmem:[%s2091_s17 + $0x140] ss:$12 sps:$4 sm:$0xff]  }
  0x26   : > { %1025 = vmatprep.mubr.bf16.mxu0 %v1989_v2  ;;  %v1924_v7 = vld [vmem:[%s2091_s17 + $0xd8] ss:$12 sps:$4 sm:$0xff]   ;;  %v1926_v8 = vld [vmem:[%s2091_s17 + $0xf4] ss:$12 sps:$4 sm:$0xff]   ;;  %v1928_v10 = vld [vmem:[%s2091_s17 + $0xf0] ss:$12 sps:$4 sm:$0xff]  }
  0x27   : > { %795 = vmatpush1.bf16.msra.mxu1 %v1858_v22  ;;  %v1941_v9 = vld [vmem:[%s2091_s17 + $0x158] ss:$12 sps:$4 sm:$0xff]   ;;  %v1945_v12 = vld [vmem:[%s2091_s17 + $0x170] ss:$12 sps:$4 sm:$0xff]   ;;  %v1932_v13 = vld [vmem:[%s2091_s17 + $0x108] ss:$12 sps:$4 sm:$0xff]  }
  0x28   : > { %796 = vmatprep.subr.bf16.mxu1 %v1859_v23  ;;  %v1930_v11 = vld [vmem:[%s2091_s17 + $0x10c] ss:$12 sps:$4 sm:$0xff]   ;;  %v1934_v14 = vld [vmem:[%s2091_s17 + $0x124] ss:$12 sps:$4 sm:$0xff]   ;;  %v1938_v16 = vld [vmem:[%s2091_s17 + $0x13c] ss:$12 sps:$4 sm:$0xff]  }
  0x29   : > { %v1936_v15 = vld [vmem:[%s2091_s17 + $0x120] ss:$12 sps:$4 sm:$0xff]   ;;  %v1944_v18 = vld [vmem:[%s2091_s17 + $0x150] ss:$12 sps:$4 sm:$0xff]   ;;  %v1948_v20 = vld [vmem:[%s2091_s17 + $0x168] ss:$12 sps:$4 sm:$0xff]  }
  0x2a   : > { %v1942_v17 = vld [vmem:[%s2091_s17 + $0x154] ss:$12 sps:$4 sm:$0xff]   ;;  %v1946_v19 = vld [vmem:[%s2091_s17 + $0x16c] ss:$12 sps:$4 sm:$0xff]   ;;  %vm1338_vm2 = vcmask (!%p1720_p11), 1046528  }
  0x2b   : > { %797 = vmatpush1.bf16.msra.mxu1 %v1861_v24 }
  0x2c   : > { %798 = vmatprep.subr.bf16.mxu1 %v1862_v26 }
  0x2d   : > { %1704 = vmatmul.mubr.msk.bf16.gmra.mrb[8].mxu0 %vm724_vm1, %v1893_v30 }
  0x2e   : > { %1035 = vmatprep.mubr.bf16.mxu0 %v1989_v2 }
  0x2f   : > { %799 = vmatpush1.bf16.msra.mxu1 %v1864_v27 }
  0x30   : > { %800 = vmatprep.subr.bf16.mxu1 %v1865_v28 }
  0x33   : > { %801 = vmatpush1.bf16.msra.mxu1 %v1867_v29 }
  0x34   : > { %802 = vmatprep.subr.bf16.mxu1 %v1868_v31 }
  0x35   : > { %1705 = vmatmul.mubr.msk.bf16.gmra.mrb[12].mxu0 %vm724_vm1, %v1897_v35 }
  0x36   : > { %1045 = vmatprep.mubr.bf16.mxu0 %v1989_v2 }
  0x37   : > { %803 = vmatpush1.bf16.msra.mxu1 %v1870_v32 }
  0x38   : > { %804 = vmatprep.subr.bf16.mxu1 %v1871_v33 }
  0x3b   : > { %805 = vmatpush1.bf16.msra.mxu1 %v1873_v34 }
  0x3c   : > { %806 = vmatprep.subr.bf16.mxu1 %v1874_v36 }
  0x3d   : > { %1706 = vmatmul.mubr.msk.bf16.gmra.mrb[16].mxu0 %vm724_vm1, %v1901_v40 }
  0x3e   : > { %1055 = vmatprep.mubr.bf16.mxu0 %v1989_v2 }
  0x3f   : > { %807 = vmatpush1.bf16.msra.mxu1 %v1876_v37 }
  0x40   : > { %808 = vmatprep.subr.bf16.mxu1 %v1877_v38 }
  0x43   : > { %809 = vmatpush1.bf16.msra.mxu1 %v1879_v39 }
  0x44   : > { %810 = vmatprep.subr.bf16.mxu1 %v1882_v41 }
  0x45   : > { %1707 = vmatmul.mubr.msk.bf16.gmra.mrb[20].mxu0 %vm724_vm1, %v1905_v45 }
  0x46   : > { %1065 = vmatprep.mubr.bf16.mxu0 %v1989_v2 }
  0x47   : > { %811 = vmatpush1.bf16.msra.mxu1 %v1884_v42 }
  0x4a   : > { %813 = vmatmul.mubr.bf16.vlgmr.msra.gmra.mrb[0].mxu1 %v1886_v43 }
  0x4b   : > { %822 = vmatprep.mubr.bf16.mxu1 %v1890_v44 }
  0x4d   : > { %1708 = vmatmul.mubr.msk.bf16.gmra.mrb[24].mxu0 %vm724_vm1, %v1909_v48 }
  0x4e   : > { %1075 = vmatprep.mubr.bf16.mxu0 %v1989_v2 }
  0x52   : > { %823 = vmatmul.mubr.bf16.gmra.mrb[4].mxu1 %v1892_v46 }
  0x53   : > { %832 = vmatprep.mubr.bf16.mxu1 %v1894_v47 }
  0x55   : > { %1709 = vmatmul.mubr.msk.bf16.gmra.mrb[28].mxu0 %vm724_vm1, %v1913_v51 }
  0x56   : > { %1085 = vmatprep.mubr.bf16.mxu0 %v1989_v2 }
  0x5a   : > { %833 = vmatmul.mubr.bf16.gmra.mrb[8].mxu1 %v1896_v49 }
  0x5b   : > { %842 = vmatprep.mubr.bf16.mxu1 %v1898_v50 }
  0x5d   : > { %1710 = vmatmul.mubr.msk.bf16.gmra.mrb[32].mxu0 %vm724_vm1, %v1917_v54 }
  0x5e   : > { %1095 = vmatprep.mubr.bf16.mxu0 %v1989_v2 }
  0x62   : > { %843 = vmatmul.mubr.bf16.gmra.mrb[12].mxu1 %v1900_v52 }
  0x63   : > { %852 = vmatprep.mubr.bf16.mxu1 %v1902_v53 }
  0x65   : > { %1711 = vmatmul.mubr.msk.bf16.gmra.mrb[36].mxu0 %vm724_vm1, %v1921_v57 }
  0x66   : > { %1105 = vmatprep.mubr.bf16.mxu0 %v1989_v2 }
  0x6a   : > { %853 = vmatmul.mubr.bf16.gmra.mrb[16].mxu1 %v1904_v55 }
  0x6b   : > { %862 = vmatprep.mubr.bf16.mxu1 %v1906_v56 }
  0x6d   : > { %1712 = vmatmul.mubr.msk.bf16.gmra.mrb[40].mxu0 %vm724_vm1, %v1925_v60 }
  0x6e   : > { %1115 = vmatprep.mubr.bf16.mxu0 %v1989_v2 }
  0x72   : > { %863 = vmatmul.mubr.bf16.gmra.mrb[20].mxu1 %v1908_v58 }
  0x73   : > { %872 = vmatprep.mubr.bf16.mxu1 %v1910_v59 }
  0x75   : > { %1713 = vmatmul.mubr.msk.bf16.gmra.mrb[44].mxu0 %vm724_vm1, %v1929_v63 }
  0x76   : > { %1125 = vmatprep.mubr.bf16.mxu0 %v1989_v2 }
  0x7a   : > { %873 = vmatmul.mubr.bf16.gmra.mrb[24].mxu1 %v1912_v61 }
  0x7b   : > { %882 = vmatprep.mubr.bf16.mxu1 %v1914_v62 }
  0x7d   : > { %1714 = vmatmul.mubr.msk.bf16.gmra.mrb[48].mxu0 %vm724_vm1, %v1933_v3 }
  0x7e   : > { %1135 = vmatprep.mubr.bf16.mxu0 %v1989_v2 }
  0x82   : > { %883 = vmatmul.mubr.bf16.gmra.mrb[28].mxu1 %v1916_v0 }
  0x83   : > { %892 = vmatprep.mubr.bf16.mxu1 %v1918_v1 }
  0x85   : > { %1715 = vmatmul.mubr.msk.bf16.gmra.mrb[52].mxu0 %vm724_vm1, %v1937_v6 }
  0x86   : > { %1145 = vmatprep.mubr.bf16.mxu0 %v1989_v2 }
  0x8a   : > { %893 = vmatmul.mubr.bf16.gmra.mrb[32].mxu1 %v1920_v4 }
  0x8b   : > { %902 = vmatprep.mubr.bf16.mxu1 %v1922_v5 }
  0x8d   : > { %1716 = vmatmul.mubr.msk.bf16.gmra.mrb[56].mxu0 %vm724_vm1, %v1941_v9 }
  0x8e   : > { %1155 = vmatprep.mubr.bf16.mxu0 %v1989_v2  ;;  %v1940_v2 = vld [vmem:[%s2091_s17 + $0x138] ss:$12 sps:$4 sm:$0xff]   ;;  %s219_s17 = sand.u32 1, %s1618_s16  }
  0x8f   : > { %s220_s18 = ssub.s32 0, %s219_s17 }
  0x90   : > { %s2620_s18 = smov (!%p216_p10, %s220_s18), %s219_s17 }
  0x91   : > { %s1725_s19 = sshll.u32 %s2620_s18, 9  ;;  %s1237_s21 = ssub.s32 (!%p1720_p11), 1, %s2620_s18 }
  0x92   : > { %903 = vmatmul.mubr.bf16.gmra.mrb[36].mxu1 %v1924_v7  ;;  %s2257_s20 = scalar_lea.vmem [#allocation2], %s1725_s19  ;;  %s1726_s23 = sshll.u32 (!%p1720_p11), %s1237_s21, 9 }
  0x93   : > { %912 = vmatprep.mubr.bf16.mxu1 %v1926_v8  ;;  %s2450_s24 = scalar_lea.vmem (!%p1720_p11), [#allocation2], %s1726_s23 }
  0x95   : > { %1717 = vmatmul.mubr.msk.bf16.gmra.mrb[60].mxu0 %vm724_vm1, %v1945_v12 }
  0x9a   : > { %913 = vmatmul.mubr.bf16.gmra.mrb[40].mxu1 %v1928_v10 }
  0x9b   : > { %922 = vmatprep.mubr.bf16.mxu1 %v1930_v11 }
  0xa2   : > { %923 = vmatmul.mubr.bf16.gmra.mrb[44].mxu1 %v1932_v13 }
  0xa3   : > { %932 = vmatprep.mubr.bf16.mxu1 %v1934_v14 }
  0xaa   : > { %933 = vmatmul.mubr.bf16.gmra.mrb[48].mxu1 %v1936_v15 }
  0xab   : > { %942 = vmatprep.mubr.bf16.mxu1 %v1938_v16 }
  0xb2   : > { %943 = vmatmul.mubr.bf16.gmra.mrb[52].mxu1 %v1940_v2 }
  0xb3   : > { %952 = vmatprep.mubr.bf16.mxu1 %v1942_v17 }
  0xba   : > { %953 = vmatmul.mubr.bf16.gmra.mrb[56].mxu1 %v1944_v18 }
  0xbb   : > { %962 = vmatprep.mubr.bf16.mxu1 %v1946_v19 }
  0xc2   : > { %963 = vmatmul.mubr.bf16.gmra.mrb[60].mxu1 %v1948_v20 }
  0xf0   : > { %v1007_v21 = vpop.f32.mrb[0].mxu0 }
  0xf1   : > { %v1009_v22 = vpop.f32.mrb[1].mxu0 }
  0xf2   : > { %v1011_v23 = vpop.f32.mrb[2].mxu0 }
  0xf3   : > { %v1013_v24 = vpop.f32.mrb[3].mxu0 }
  0xf8   : > { %v1017_v25 = vpop.f32.mrb[4].mxu0 }
  0xf9   : > { %v1019_v26 = vpop.f32.mrb[5].mxu0 }
  0xfa   : > { %v1021_v27 = vpop.f32.mrb[6].mxu0 }
  0xfb   : > { %v1023_v28 = vpop.f32.mrb[7].mxu0 }
 0x100   : > { %v1027_v29 = vpop.f32.mrb[8].mxu0 }
 0x101   : > { %v1029_v30 = vpop.f32.mrb[9].mxu0 }
 0x102   : > { %v1031_v31 = vpop.f32.mrb[10].mxu0 }
 0x103   : > { %v1033_v32 = vpop.f32.mrb[11].mxu0 }
 0x108   : > { %v2231_v33 = vpop.f32.mrb[12].mxu0 }
 0x109   : > { %v2233_v34 = vpop.f32.mrb[13].mxu0 }
 0x10a   : > { %v2235_v35 = vpop.f32.mrb[14].mxu0 }
 0x10b   : > { %v2237_v36 = vpop.f32.mrb[15].mxu0 }
 0x110   : > { %v2242_v37 = vpop.f32.mrb[16].mxu0 }
 0x111   : > { %v2244_v38 = vpop.f32.mrb[17].mxu0 }
 0x112   : > { %v2246_v39 = vpop.f32.mrb[18].mxu0 }
 0x113   : > { %v2248_v40 = vpop.f32.mrb[19].mxu0 }
 0x118   : > { %v2253_v44 = vpop.f32.mrb[20].mxu0 }
 0x119   : > { %v2255_v47 = vpop.f32.mrb[21].mxu0 }
 0x11a   : > { %v2261_v50 = vpop.f32.mrb[22].mxu0 }
 0x11b   : > { %v2264_v52 = vpop.f32.mrb[23].mxu0 }
 0x11d   : > { %v814_v41 = vpop.f32.mrb[0].mxu1 }
 0x11e   : > { %v2251_v42 = vadd.f32 %v1007_v21, %v814_v41  ;;  %v816_v43 = vpop.f32.mrb[1].mxu1 }
 0x11f   : > { %v1010_v45 = vadd.f32 %v1009_v22, %v816_v43  ;;  %v818_v46 = vpop.f32.mrb[2].mxu1 }
 0x120   : > { %1169 = vst [vmem:[%s2257_s20] sm:$0xff] %v2251_v42  ;;  %v1012_v48 = vadd.f32 %v1011_v23, %v818_v46  ;;  %v820_v49 = vpop.f32.mrb[3].mxu1  ;;  %v2268_v56 = vpop.f32.mrb[24].mxu0 }
 0x121   : > { %1170 = vst [vmem:[%s2257_s20 + $0x8] sm:$0xff] %v1010_v45  ;;  %v1014_v51 = vadd.f32 %v1013_v24, %v820_v49  ;;  %v2270_v59 = vpop.f32.mrb[25].mxu0 }
 0x122   : > { %1171 = vst [vmem:[%s2257_s20 + $0x10] sm:$0xff] %v1012_v48  ;;  %v2273_v62 = vpop.f32.mrb[26].mxu0 }
 0x123   : > { %1172 = vst [vmem:[%s2257_s20 + $0x18] sm:$0xff] %v1014_v51  ;;  %v2276_v0 = vpop.f32.mrb[27].mxu0 }
 0x125   : > { %v824_v53 = vpop.f32.mrb[4].mxu1 }
 0x126   : > { %v1018_v54 = vadd.f32 %v1017_v25, %v824_v53  ;;  %v826_v55 = vpop.f32.mrb[5].mxu1 }
 0x127   : > { %v1020_v57 = vadd.f32 %v1019_v26, %v826_v55  ;;  %v828_v58 = vpop.f32.mrb[6].mxu1 }
 0x128   : > { %1173 = vst [vmem:[%s2257_s20 + $0x20] sm:$0xff] %v1018_v54  ;;  %v1022_v60 = vadd.f32 %v1021_v27, %v828_v58  ;;  %v830_v61 = vpop.f32.mrb[7].mxu1  ;;  %v2280_v5 = vpop.f32.mrb[28].mxu0 }
 0x129   : > { %1174 = vst [vmem:[%s2257_s20 + $0x28] sm:$0xff] %v1020_v57  ;;  %v1024_v63 = vadd.f32 %v1023_v28, %v830_v61  ;;  %v2282_v8 = vpop.f32.mrb[29].mxu0 }
 0x12a   : > { %1175 = vst [vmem:[%s2257_s20 + $0x30] sm:$0xff] %v1022_v60  ;;  %v2285_v11 = vpop.f32.mrb[30].mxu0 }
 0x12b   : > { %1176 = vst [vmem:[%s2257_s20 + $0x38] sm:$0xff] %v1024_v63  ;;  %v2288_v13 = vpop.f32.mrb[31].mxu0 }
 0x12d   : > { %v834_v1 = vpop.f32.mrb[8].mxu1 }
 0x12e   : > { %v1028_v3 = vadd.f32 %v1027_v29, %v834_v1  ;;  %v836_v4 = vpop.f32.mrb[9].mxu1 }
 0x12f   : > { %v1030_v6 = vadd.f32 %v1029_v30, %v836_v4  ;;  %v838_v7 = vpop.f32.mrb[10].mxu1 }
 0x130   : > { %1177 = vst [vmem:[%s2257_s20 + $0x40] sm:$0xff] %v1028_v3  ;;  %v1032_v9 = vadd.f32 %v1031_v31, %v838_v7  ;;  %v840_v10 = vpop.f32.mrb[11].mxu1  ;;  %v2293_v2 = vpop.f32.mrb[32].mxu0 }
 0x131   : > { %1178 = vst [vmem:[%s2257_s20 + $0x48] sm:$0xff] %v1030_v6  ;;  %v1034_v12 = vadd.f32 %v1033_v32, %v840_v10  ;;  %v2296_v19 = vpop.f32.mrb[33].mxu0 }
 0x132   : > { %1179 = vst [vmem:[%s2257_s20 + $0x50] sm:$0xff] %v1032_v9  ;;  %v2300_v22 = vpop.f32.mrb[34].mxu0 }
 0x133   : > { %1180 = vst [vmem:[%s2257_s20 + $0x58] sm:$0xff] %v1034_v12  ;;  %v2304_v24 = vpop.f32.mrb[35].mxu0 }
 0x135   : > { %v844_v14 = vpop.f32.mrb[12].mxu1 }
 0x136   : > { %v1038_v15 = vadd.f32 %v2231_v33, %v844_v14  ;;  %v846_v16 = vpop.f32.mrb[13].mxu1 }
 0x137   : > { %v1040_v17 = vadd.f32 %v2233_v34, %v846_v16  ;;  %v848_v18 = vpop.f32.mrb[14].mxu1 }
 0x138   : > { %1181 = vst [vmem:[%s2257_s20 + $0x60] sm:$0xff] %v1038_v15  ;;  %v1042_v20 = vadd.f32 %v2235_v35, %v848_v18  ;;  %v850_v21 = vpop.f32.mrb[15].mxu1  ;;  %v2309_v28 = vpop.f32.mrb[36].mxu0 }
 0x139   : > { %1182 = vst [vmem:[%s2257_s20 + $0x68] sm:$0xff] %v1040_v17  ;;  %v1044_v23 = vadd.f32 %v2237_v36, %v850_v21  ;;  %v2312_v31 = vpop.f32.mrb[37].mxu0 }
 0x13a   : > { %1183 = vst [vmem:[%s2257_s20 + $0x70] sm:$0xff] %v1042_v20  ;;  %v2316_v34 = vpop.f32.mrb[38].mxu0 }
 0x13b   : > { %1184 = vst [vmem:[%s2257_s20 + $0x78] sm:$0xff] %v1044_v23  ;;  %v2320_v36 = vpop.f32.mrb[39].mxu0 }
 0x13d   : > { %v854_v25 = vpop.f32.mrb[16].mxu1 }
 0x13e   : > { %v1048_v26 = vadd.f32 %v2242_v37, %v854_v25  ;;  %v856_v27 = vpop.f32.mrb[17].mxu1 }
 0x13f   : > { %v1050_v29 = vadd.f32 %v2244_v38, %v856_v27  ;;  %v858_v30 = vpop.f32.mrb[18].mxu1 }
 0x140   : > { %1185 = vst [vmem:[%s2257_s20 + $0x80] sm:$0xff] %v1048_v26  ;;  %v1052_v32 = vadd.f32 %v2246_v39, %v858_v30  ;;  %v860_v33 = vpop.f32.mrb[19].mxu1  ;;  %v2325_v43 = vpop.f32.mrb[40].mxu0 }
 0x141   : > { %1186 = vst [vmem:[%s2257_s20 + $0x88] sm:$0xff] %v1050_v29  ;;  %v1054_v35 = vadd.f32 %v2248_v40, %v860_v33  ;;  %v2328_v46 = vpop.f32.mrb[41].mxu0 }
 0x142   : > { %1187 = vst [vmem:[%s2257_s20 + $0x90] sm:$0xff] %v1052_v32  ;;  %v2332_v49 = vpop.f32.mrb[42].mxu0 }
 0x143   : > { %1188 = vst [vmem:[%s2257_s20 + $0x98] sm:$0xff] %v1054_v35 }
 0x145   : > { %v864_v37 = vpop.f32.mrb[20].mxu1 }
 0x146   : > { %v1058_v38 = vadd.f32 %v2253_v44, %v864_v37  ;;  %v866_v41 = vpop.f32.mrb[21].mxu1  ;;  %v2336_v44 = vpop.f32.mrb[43].mxu0 }
 0x147   : > { %v1060_v39 = vadd.f32 %v2255_v47, %v866_v41  ;;  %v868_v45 = vpop.f32.mrb[22].mxu1 }
 0x148   : > { %1189 = vst [vmem:[%s2257_s20 + $0xa0] sm:$0xff] %v1058_v38  ;;  %v1062_v40 = vadd.f32 %v2261_v50, %v868_v45  ;;  %v870_v48 = vpop.f32.mrb[23].mxu1  ;;  %v2341_v55 = vpop.f32.mrb[44].mxu0 }
 0x149   : > { %1190 = vst [vmem:[%s2257_s20 + $0xa8] sm:$0xff] %v1060_v39  ;;  %v1064_v51 = vadd.f32 %v2264_v52, %v870_v48  ;;  %v2344_v58 = vpop.f32.mrb[45].mxu0 }
 0x14a   : > { %1191 = vst [vmem:[%s2257_s20 + $0xb0] sm:$0xff] %v1062_v40  ;;  %v2348_v61 = vpop.f32.mrb[46].mxu0 }
 0x14b   : > { %1192 = vst [vmem:[%s2257_s20 + $0xb8] sm:$0xff] %v1064_v51 }
 0x14d   : > { %v874_v47 = vpop.f32.mrb[24].mxu1 }
 0x14e   : > { %v1068_v53 = vadd.f32 %v2268_v56, %v874_v47  ;;  %v876_v54 = vpop.f32.mrb[25].mxu1  ;;  %v2352_v56 = vpop.f32.mrb[47].mxu0 }
 0x14f   : > { %v1070_v50 = vadd.f32 %v2270_v59, %v876_v54  ;;  %v878_v57 = vpop.f32.mrb[26].mxu1 }
 0x150   : > { %1193 = vst [vmem:[%s2257_s20 + $0xc0] sm:$0xff] %v1068_v53  ;;  %v1072_v52 = vadd.f32 %v2273_v62, %v878_v57  ;;  %v880_v60 = vpop.f32.mrb[27].mxu1  ;;  %v2357_v4 = vpop.f32.mrb[48].mxu0 }
 0x151   : > { %1194 = vst [vmem:[%s2257_s20 + $0xc8] sm:$0xff] %v1070_v50  ;;  %v1074_v63 = vadd.f32 %v2276_v0, %v880_v60  ;;  %v2360_v7 = vpop.f32.mrb[49].mxu0 }
 0x152   : > { %1195 = vst [vmem:[%s2257_s20 + $0xd0] sm:$0xff] %v1072_v52  ;;  %v2364_v10 = vpop.f32.mrb[50].mxu0 }
 0x153   : > { %1196 = vst [vmem:[%s2257_s20 + $0xd8] sm:$0xff] %v1074_v63 }
 0x155   : > { %v884_v59 = vpop.f32.mrb[28].mxu1 }
 0x156   : > { %v1078_v1 = vadd.f32 %v2280_v5, %v884_v59  ;;  %v886_v3 = vpop.f32.mrb[29].mxu1  ;;  %v2368_v5 = vpop.f32.mrb[51].mxu0 }
 0x157   : > { %v1080_v62 = vadd.f32 %v2282_v8, %v886_v3  ;;  %v888_v6 = vpop.f32.mrb[30].mxu1 }
 0x158   : > { %1197 = vst [vmem:[%s2257_s20 + $0xe0] sm:$0xff] %v1078_v1  ;;  %v1082_v0 = vadd.f32 %v2285_v11, %v888_v6  ;;  %v890_v9 = vpop.f32.mrb[31].mxu1  ;;  %v2373_v16 = vpop.f32.mrb[52].mxu0 }
 0x159   : > { %1198 = vst [vmem:[%s2257_s20 + $0xe8] sm:$0xff] %v1080_v62  ;;  %v1084_v12 = vadd.f32 %v2288_v13, %v890_v9  ;;  %v2376_v18 = vpop.f32.mrb[53].mxu0 }
 0x15a   : > { %1199 = vst [vmem:[%s2257_s20 + $0xf0] sm:$0xff] %v1082_v0  ;;  %v2380_v21 = vpop.f32.mrb[54].mxu0 }
 0x15b   : > { %1200 = vst [vmem:[%s2257_s20 + $0xf8] sm:$0xff] %v1084_v12 }
 0x15d   : > { %v894_v8 = vpop.f32.mrb[32].mxu1 }
 0x15e   : > { %v1088_v14 = vadd.f32 %v2293_v2, %v894_v8  ;;  %v896_v15 = vpop.f32.mrb[33].mxu1  ;;  %v2384_v2 = vpop.f32.mrb[55].mxu0 }
 0x15f   : > { %v1090_v11 = vadd.f32 %v2296_v19, %v896_v15  ;;  %v898_v17 = vpop.f32.mrb[34].mxu1 }
 0x160   : > { %1201 = vst [vmem:[%s2257_s20 + $0x100] sm:$0xff] %v1088_v14  ;;  %v1092_v13 = vadd.f32 %v2300_v22, %v898_v17  ;;  %v900_v20 = vpop.f32.mrb[35].mxu1  ;;  %v2389_v27 = vpop.f32.mrb[56].mxu0 }
 0x161   : > { %1202 = vst [vmem:[%s2257_s20 + $0x108] sm:$0xff] %v1090_v11  ;;  %v1094_v23 = vadd.f32 %v2304_v24, %v900_v20  ;;  %v2392_v30 = vpop.f32.mrb[57].mxu0 }
 0x162   : > { %1203 = vst [vmem:[%s2257_s20 + $0x110] sm:$0xff] %v1092_v13  ;;  %v2396_v33 = vpop.f32.mrb[58].mxu0 }
 0x163   : > { %1204 = vst [vmem:[%s2257_s20 + $0x118] sm:$0xff] %v1094_v23 }
 0x165   : > { %v904_v19 = vpop.f32.mrb[36].mxu1 }
 0x166   : > { %v1098_v25 = vadd.f32 %v2309_v28, %v904_v19  ;;  %v906_v26 = vpop.f32.mrb[37].mxu1  ;;  %v2400_v28 = vpop.f32.mrb[59].mxu0 }
 0x167   : > { %v1100_v22 = vadd.f32 %v2312_v31, %v906_v26  ;;  %v908_v29 = vpop.f32.mrb[38].mxu1 }
 0x168   : > { %1205 = vst [vmem:[%s2257_s20 + $0x120] sm:$0xff] %v1098_v25  ;;  %v1102_v24 = vadd.f32 %v2316_v34, %v908_v29  ;;  %v910_v32 = vpop.f32.mrb[39].mxu1  ;;  %v1157_v41 = vpop.f32.mrb[60].mxu0 }
 0x169   : > { %1206 = vst [vmem:[%s2257_s20 + $0x128] sm:$0xff] %v1100_v22  ;;  %v1104_v35 = vadd.f32 %v2320_v36, %v910_v32  ;;  %v1159_v45 = vpop.f32.mrb[61].mxu0 }
 0x16a   : > { %1207 = vst [vmem:[%s2257_s20 + $0x130] sm:$0xff] %v1102_v24  ;;  %v1161_v48 = vpop.f32.mrb[62].mxu0 }
 0x16b   : > { %1208 = vst [vmem:[%s2257_s20 + $0x138] sm:$0xff] %v1104_v35  ;;  %v1163_v47 = vpop.f32.mrb[63].mxu0 }
 0x16d   : > { %v914_v31 = vpop.f32.mrb[40].mxu1 }
 0x16e   : > { %v1108_v37 = vadd.f32 %v2325_v43, %v914_v31  ;;  %v916_v38 = vpop.f32.mrb[41].mxu1 }
 0x16f   : > { %v1110_v34 = vadd.f32 %v2328_v46, %v916_v38  ;;  %v918_v39 = vpop.f32.mrb[42].mxu1 }
 0x170   : > { %1209 = vst [vmem:[%s2257_s20 + $0x140] sm:$0xff] %v1108_v37  ;;  %v1112_v40 = vadd.f32 %v2332_v49, %v918_v39  ;;  %v920_v36 = vpop.f32.mrb[43].mxu1 }
 0x171   : > { %1210 = vst [vmem:[%s2257_s20 + $0x148] sm:$0xff] %v1110_v34  ;;  %v1114_v51 = vadd.f32 %v2336_v44, %v920_v36 }
 0x172   : > { %1211 = vst [vmem:[%s2257_s20 + $0x150] sm:$0xff] %v1112_v40 }
 0x173   : > { %1212 = vst [vmem:[%s2257_s20 + $0x158] sm:$0xff] %v1114_v51 }
 0x175   : > { %v924_v43 = vpop.f32.mrb[44].mxu1 }
 0x176   : > { %v1118_v46 = vadd.f32 %v2341_v55, %v924_v43  ;;  %v926_v53 = vpop.f32.mrb[45].mxu1 }
 0x177   : > { %v1120_v54 = vadd.f32 %v2344_v58, %v926_v53  ;;  %v928_v50 = vpop.f32.mrb[46].mxu1 }
 0x178   : > { %1213 = vst [vmem:[%s2257_s20 + $0x160] sm:$0xff] %v1118_v46  ;;  %v1122_v49 = vadd.f32 %v2348_v61, %v928_v50  ;;  %v930_v57 = vpop.f32.mrb[47].mxu1 }
 0x179   : > { %1214 = vst [vmem:[%s2257_s20 + $0x168] sm:$0xff] %v1120_v54  ;;  %v1124_v44 = vadd.f32 %v2352_v56, %v930_v57 }
 0x17a   : > { %1215 = vst [vmem:[%s2257_s20 + $0x170] sm:$0xff] %v1122_v49 }
 0x17b   : > { %1216 = vst [vmem:[%s2257_s20 + $0x178] sm:$0xff] %v1124_v44 }
 0x17d   : > { %v934_v52 = vpop.f32.mrb[48].mxu1 }
 0x17e   : > { %v1128_v55 = vadd.f32 %v2357_v4, %v934_v52  ;;  %v936_v60 = vpop.f32.mrb[49].mxu1 }
 0x17f   : > { %v1130_v58 = vadd.f32 %v2360_v7, %v936_v60  ;;  %v938_v63 = vpop.f32.mrb[50].mxu1 }
 0x180   : > { %1217 = vst [vmem:[%s2257_s20 + $0x180] sm:$0xff] %v1128_v55  ;;  %v1132_v61 = vadd.f32 %v2364_v10, %v938_v63  ;;  %v940_v59 = vpop.f32.mrb[51].mxu1 }
 0x181   : > { %1218 = vst [vmem:[%s2257_s20 + $0x188] sm:$0xff] %v1130_v58  ;;  %v1134_v56 = vadd.f32 %v2368_v5, %v940_v59 }
 0x182   : > { %1219 = vst [vmem:[%s2257_s20 + $0x190] sm:$0xff] %v1132_v61 }
 0x183   : > { %1220 = vst [vmem:[%s2257_s20 + $0x198] sm:$0xff] %v1134_v56 }
 0x185   : > { %v944_v1 = vpop.f32.mrb[52].mxu1 }
 0x186   : > { %v1138_v3 = vadd.f32 %v2373_v16, %v944_v1  ;;  %v946_v4 = vpop.f32.mrb[53].mxu1 }
 0x187   : > { %v1140_v62 = vadd.f32 %v2376_v18, %v946_v4  ;;  %v948_v6 = vpop.f32.mrb[54].mxu1 }
 0x188   : > { %1221 = vst [vmem:[%s2257_s20 + $0x1a0] sm:$0xff] %v1138_v3  ;;  %v1142_v7 = vadd.f32 %v2380_v21, %v948_v6  ;;  %v950_v0 = vpop.f32.mrb[55].mxu1 }
 0x189   : > { %1222 = vst [vmem:[%s2257_s20 + $0x1a8] sm:$0xff] %v1140_v62  ;;  %v1144_v9 = vadd.f32 %v2384_v2, %v950_v0 }
 0x18a   : > { %1223 = vst [vmem:[%s2257_s20 + $0x1b0] sm:$0xff] %v1142_v7 }
 0x18b   : > { %1224 = vst [vmem:[%s2257_s20 + $0x1b8] sm:$0xff] %v1144_v9 }
 0x18d   : > { %v954_v10 = vpop.f32.mrb[56].mxu1 }
 0x18e   : > { %v1148_v12 = vadd.f32 %v2389_v27, %v954_v10  ;;  %v956_v5 = vpop.f32.mrb[57].mxu1 }
 0x18f   : > { %v1150_v8 = vadd.f32 %v2392_v30, %v956_v5  ;;  %v958_v14 = vpop.f32.mrb[58].mxu1 }
 0x190   : > { %1225 = vst [vmem:[%s2257_s20 + $0x1c0] sm:$0xff] %v1148_v12  ;;  %v1152_v15 = vadd.f32 %v2396_v33, %v958_v14  ;;  %v960_v16 = vpop.f32.mrb[59].mxu1 }
 0x191   : > { %1226 = vst [vmem:[%s2257_s20 + $0x1c8] sm:$0xff] %v1150_v8  ;;  %v1154_v11 = vadd.f32 %v2400_v28, %v960_v16 }
 0x192   : > { %1227 = vst [vmem:[%s2257_s20 + $0x1d0] sm:$0xff] %v1152_v15 }
 0x193   : > { %1228 = vst [vmem:[%s2257_s20 + $0x1d8] sm:$0xff] %v1154_v11 }
 0x195   : > { %v964_v17 = vpop.f32.mrb[60].mxu1  ;;  %1236 = sbr.rel (%p1720_p11) target bundleno = 448 (0x1c0), region = 32 }
 0x196   : > { %v1158_v18 = vadd.f32 %v1157_v41, %v964_v17  ;;  %v966_v13 = vpop.f32.mrb[61].mxu1 }
 0x197   : > { %v1160_v20 = vadd.f32 %v1159_v45, %v966_v13  ;;  %v968_v21 = vpop.f32.mrb[62].mxu1 }
 0x198   : > { %1229 = vst [vmem:[%s2257_s20 + $0x1e0] sm:$0xff] %v1158_v18  ;;  %v1162_v23 = vadd.f32 %v1161_v48, %v968_v21  ;;  %v970_v2 = vpop.f32.mrb[63].mxu1 }
 0x199   : > { %1230 = vst [vmem:[%s2257_s20 + $0x1e8] sm:$0xff] %v1160_v20  ;;  %v1164_v19 = vadd.f32 %v1163_v47, %v970_v2  ;;  %v1402_v47 = vrot.slane (!%p1720_p11), %v2251_v42, 1 }
 0x19a   : > { %1231 = vst [vmem:[%s2257_s20 + $0x1f0] sm:$0xff] %v1162_v23 }
 0x19b   : > { %1232 = vst [vmem:[%s2257_s20 + $0x1f8] sm:$0xff] %v1164_v19 }
 0x1a2   : > { %v1241_v25 = vld [vmem:[%s2450_s24] sm:$0xff]  ;;  %v1243_v26 = vld [vmem:[%s2450_s24 + $0x10] sm:$0xff]  ;;  %v1242_v27 = vld [vmem:[%s2450_s24 + $0x8] sm:$0xff] }
 0x1a3   : > { %v1339_v22 = vrot.slane %v1241_v25, 1  ;;  %v1340_v29 = vrot.slane %v1243_v26, 1  ;;  %v1245_v30 = vld [vmem:[%s2450_s24 + $0x20] sm:$0xff]  ;;  %v1244_v24 = vld [vmem:[%s2450_s24 + $0x18] sm:$0xff]  ;;  %v1247_v33 = vld [vmem:[%s2450_s24 + $0x30] sm:$0xff] }
 0x1a4   : > { %v1342_v32 = vrot.slane %v1245_v30, 1  ;;  %v1249_v35 = vld [vmem:[%s2450_s24 + $0x40] sm:$0xff]  ;;  %v1246_v31 = vld [vmem:[%s2450_s24 + $0x28] sm:$0xff]  ;;  %v1344_v37 = vrot.slane %v1247_v33, 1  ;;  %v1248_v38 = vld [vmem:[%s2450_s24 + $0x38] sm:$0xff] }
 0x1a5   : > { %v1341_v28 = vsel %vm1338_vm2, %v1339_v22, %v1340_v29  ;;  %v1346_v41 = vrot.slane %v1249_v35, 1  ;;  %v1251_v34 = vld [vmem:[%s2450_s24 + $0x50] sm:$0xff]  ;;  %v1250_v40 = vld [vmem:[%s2450_s24 + $0x48] sm:$0xff]  ;;  %v1253_v48 = vld [vmem:[%s2450_s24 + $0x60] sm:$0xff] }
 0x1a6   : > { %v1436_v39 = vadd.f32 %v1341_v28, %v1242_v27  ;;  %v1343_v45 = vsel %vm1338_vm2, %v1340_v29, %v1342_v32  ;;  %v1348_v36 = vrot.slane %v1251_v34, 1  ;;  %v1255_v51 = vld [vmem:[%s2450_s24 + $0x70] sm:$0xff]  ;;  %v1345_v46 = vsel %vm1338_vm2, %v1342_v32, %v1344_v37  ;;  %v1252_v54 = vld [vmem:[%s2450_s24 + $0x58] sm:$0xff]  ;;  %v1254_v49 = vld [vmem:[%s2450_s24 + $0x68] sm:$0xff] }
 0x1a7   : > { %v1437_v43 = vadd.f32 %v1343_v45, %v1244_v24  ;;  %v1347_v53 = vsel %vm1338_vm2, %v1344_v37, %v1346_v41  ;;  %v1350_v50 = vrot.slane %v1253_v48, 1  ;;  %v1257_v57 = vld [vmem:[%s2450_s24 + $0x80] sm:$0xff]  ;;  %v1438_v44 = vadd.f32 %v1345_v46, %v1246_v31  ;;  %v1256_v58 = vld [vmem:[%s2450_s24 + $0x78] sm:$0xff]  ;;  %v1259_v63 = vld [vmem:[%s2450_s24 + $0x90] sm:$0xff] }
 0x1a8   : > { %1468 = vst [vmem:[%s2083_s5] sm:$0xff] %v1436_v39  ;;  %v1439_v52 = vadd.f32 %v1347_v53, %v1248_v38  ;;  %v1349_v55 = vsel %vm1338_vm2, %v1346_v41, %v1348_v36  ;;  %v1352_v60 = vrot.slane %v1255_v51, 1  ;;  %v1261_v61 = vld [vmem:[%s2450_s24 + $0xa0] sm:$0xff]  ;;  %v1354_v1 = vrot.slane %v1257_v57, 1  ;;  %v1258_v3 = vld [vmem:[%s2450_s24 + $0x88] sm:$0xff]  ;;  %v1260_v62 = vld [vmem:[%s2450_s24 + $0x98] sm:$0xff] }
 0x1a9   : > { %1469 = vst [vmem:[%s2083_s5 + $0x8] sm:$0xff] %v1437_v43  ;;  %v1440_v59 = vadd.f32 %v1349_v55, %v1250_v40  ;;  %v1351_v56 = vsel %vm1338_vm2, %v1348_v36, %v1350_v50  ;;  %v1356_v4 = vrot.slane %v1259_v63, 1  ;;  %v1263_v6 = vld [vmem:[%s2450_s24 + $0xb0] sm:$0xff]  ;;  %1470 = vst [vmem:[%s2083_s5 + $0x10] sm:$0xff] %v1438_v44  ;;  %v1358_v9 = vrot.slane %v1261_v61, 1  ;;  %v1262_v10 = vld [vmem:[%s2450_s24 + $0xa8] sm:$0xff] }
 0x1aa   : > { %1471 = vst [vmem:[%s2083_s5 + $0x18] sm:$0xff] %v1439_v52  ;;  %v1441_v7 = vadd.f32 %v1351_v56, %v1252_v54  ;;  %v1353_v0 = vsel %vm1338_vm2, %v1350_v50, %v1352_v60  ;;  %v1360_v12 = vrot.slane %v1263_v6, 1  ;;  %v1265_v5 = vld [vmem:[%s2450_s24 + $0xc0] sm:$0xff]  ;;  %v1267_v8 = vld [vmem:[%s2450_s24 + $0xd0] sm:$0xff]  ;;  %v1355_v15 = vsel %vm1338_vm2, %v1352_v60, %v1354_v1  ;;  %v1264_v11 = vld [vmem:[%s2450_s24 + $0xb8] sm:$0xff] }
 0x1ab   : > { %1472 = vst [vmem:[%s2083_s5 + $0x20] sm:$0xff] %v1440_v59  ;;  %v1442_v14 = vadd.f32 %v1353_v0, %v1254_v49  ;;  %v1357_v16 = vsel %vm1338_vm2, %v1354_v1, %v1356_v4  ;;  %v1362_v17 = vrot.slane %v1265_v5, 1  ;;  %v1269_v18 = vld [vmem:[%s2450_s24 + $0xe0] sm:$0xff]  ;;  %v1443_v13 = vadd.f32 %v1355_v15, %v1256_v58  ;;  %v1266_v2 = vld [vmem:[%s2450_s24 + $0xc8] sm:$0xff]  ;;  %v1271_v19 = vld [vmem:[%s2450_s24 + $0xf0] sm:$0xff] }
 0x1ac   : > { %1473 = vst [vmem:[%s2083_s5 + $0x28] sm:$0xff] %v1441_v7  ;;  %v1444_v20 = vadd.f32 %v1357_v16, %v1258_v3  ;;  %v1359_v21 = vsel %vm1338_vm2, %v1356_v4, %v1358_v9  ;;  %v1361_v23 = vsel %vm1338_vm2, %v1358_v9, %v1360_v12  ;;  %v1273_v25 = vld [vmem:[%s2450_s24 + $0x100] sm:$0xff]  ;;  %v1364_v29 = vrot.slane %v1267_v8, 1  ;;  %v1268_v30 = vld [vmem:[%s2450_s24 + $0xd8] sm:$0xff]  ;;  %v1270_v24 = vld [vmem:[%s2450_s24 + $0xe8] sm:$0xff] }
 0x1ad   : > { %1474 = vst [vmem:[%s2083_s5 + $0x30] sm:$0xff] %v1442_v14  ;;  %v1445_v26 = vadd.f32 %v1359_v21, %v1260_v62  ;;  %v1446_v27 = vadd.f32 %v1361_v23, %v1262_v10  ;;  %v1363_v22 = vsel %vm1338_vm2, %v1360_v12, %v1362_v17  ;;  %v1275_v32 = vld [vmem:[%s2450_s24 + $0x110] sm:$0xff]  ;;  %1475 = vst [vmem:[%s2083_s5 + $0x38] sm:$0xff] %v1443_v13  ;;  %v1366_v35 = vrot.slane %v1269_v18, 1  ;;  %v1272_v31 = vld [vmem:[%s2450_s24 + $0xf8] sm:$0xff] }
 0x1ae   : > { %1476 = vst [vmem:[%s2083_s5 + $0x40] sm:$0xff] %v1444_v20  ;;  %v1447_v33 = vadd.f32 %v1363_v22, %v1264_v11  ;;  %v1368_v28 = vrot.slane %v1271_v19, 1  ;;  %v1370_v37 = vrot.slane %v1273_v25, 1  ;;  %v1277_v38 = vld [vmem:[%s2450_s24 + $0x120] sm:$0xff]  ;;  %v1279_v41 = vld [vmem:[%s2450_s24 + $0x130] sm:$0xff]  ;;  %v1365_v34 = vsel %vm1338_vm2, %v1362_v17, %v1364_v29  ;;  %v1274_v39 = vld [vmem:[%s2450_s24 + $0x108] sm:$0xff] }
 0x1af   : > { %1477 = vst [vmem:[%s2083_s5 + $0x48] sm:$0xff] %v1445_v26  ;;  %1478 = vst [vmem:[%s2083_s5 + $0x50] sm:$0xff] %v1446_v27  ;;  %v1372_v45 = vrot.slane %v1275_v32, 1  ;;  %v1276_v40 = vld [vmem:[%s2450_s24 + $0x118] sm:$0xff]  ;;  %v1374_v36 = vrot.slane %v1277_v38, 1  ;;  %v1376_v48 = vrot.slane %v1279_v41, 1  ;;  %v1448_v43 = vadd.f32 %v1365_v34, %v1266_v2 }
 0x1b0   : > { %v1281_v51 = vld [vmem:[%s2450_s24 + $0x140] sm:$0xff]  ;;  %1479 = vst [vmem:[%s2083_s5 + $0x58] sm:$0xff] %v1447_v33  ;;  %v1367_v46 = vsel %vm1338_vm2, %v1364_v29, %v1366_v35  ;;  %v1369_v53 = vsel %vm1338_vm2, %v1366_v35, %v1368_v28  ;;  %v1371_v54 = vsel %vm1338_vm2, %v1368_v28, %v1370_v37  ;;  %v1278_v50 = vld [vmem:[%s2450_s24 + $0x128] sm:$0xff]  ;;  %v1283_v49 = vld [vmem:[%s2450_s24 + $0x150] sm:$0xff] }
 0x1b1   : > { %v1285_v57 = vld [vmem:[%s2450_s24 + $0x160] sm:$0xff]  ;;  %v1449_v44 = vadd.f32 %v1367_v46, %v1268_v30  ;;  %v1450_v52 = vadd.f32 %v1369_v53, %v1270_v24  ;;  %v1451_v55 = vadd.f32 %v1371_v54, %v1272_v31  ;;  %v1373_v60 = vsel %vm1338_vm2, %v1370_v37, %v1372_v45  ;;  %v1287_v58 = vld [vmem:[%s2450_s24 + $0x170] sm:$0xff]  ;;  %1480 = vst [vmem:[%s2083_s5 + $0x60] sm:$0xff] %v1448_v43  ;;  %v1280_v56 = vld [vmem:[%s2450_s24 + $0x138] sm:$0xff] }
 0x1b2   : > { %v1452_v63 = vadd.f32 %v1373_v60, %v1274_v39  ;;  %v1375_v61 = vsel %vm1338_vm2, %v1372_v45, %v1374_v36  ;;  %v1377_v59 = vsel %vm1338_vm2, %v1374_v36, %v1376_v48  ;;  %v1378_v1 = vrot.slane %v1281_v51, 1  ;;  %v1289_v3 = vld [vmem:[%s2450_s24 + $0x180] sm:$0xff]  ;;  %v1291_v4 = vld [vmem:[%s2450_s24 + $0x190] sm:$0xff]  ;;  %v1282_v7 = vld [vmem:[%s2450_s24 + $0x148] sm:$0xff] }
 0x1b3   : > { %1481 = vst [vmem:[%s2083_s5 + $0x68] sm:$0xff] %v1449_v44  ;;  %1482 = vst [vmem:[%s2083_s5 + $0x70] sm:$0xff] %v1450_v52  ;;  %v1453_v62 = vadd.f32 %v1375_v61, %v1276_v40  ;;  %v1454_v6 = vadd.f32 %v1377_v59, %v1278_v50  ;;  %v1380_v0 = vrot.slane %v1283_v49, 1  ;;  %v1284_v9 = vld [vmem:[%s2450_s24 + $0x158] sm:$0xff]  ;;  %v1382_v10 = vrot.slane %v1285_v57, 1  ;;  %v1293_v12 = vld [vmem:[%s2450_s24 + $0x1a0] sm:$0xff] }
 0x1b4   : > { %1483 = vst [vmem:[%s2083_s5 + $0x78] sm:$0xff] %v1451_v55  ;;  %1484 = vst [vmem:[%s2083_s5 + $0x80] sm:$0xff] %v1452_v63  ;;  %v1379_v5 = vsel %vm1338_vm2, %v1376_v48, %v1378_v1  ;;  %v1286_v8 = vld [vmem:[%s2450_s24 + $0x168] sm:$0xff]  ;;  %v1384_v14 = vrot.slane %v1287_v58, 1  ;;  %v1288_v15 = vld [vmem:[%s2450_s24 + $0x178] sm:$0xff]  ;;  %v1386_v16 = vrot.slane %v1289_v3, 1 }
 0x1b5   : > { %v1290_v11 = vld [vmem:[%s2450_s24 + $0x188] sm:$0xff]  ;;  %v1388_v17 = vrot.slane %v1291_v4, 1  ;;  %1485 = vst [vmem:[%s2083_s5 + $0x88] sm:$0xff] %v1453_v62  ;;  %1486 = vst [vmem:[%s2083_s5 + $0x90] sm:$0xff] %v1454_v6  ;;  %v1455_v18 = vadd.f32 %v1379_v5, %v1280_v56  ;;  %v1381_v13 = vsel %vm1338_vm2, %v1378_v1, %v1380_v0  ;;  %v1383_v20 = vsel %vm1338_vm2, %v1380_v0, %v1382_v10  ;;  %v1292_v21 = vld [vmem:[%s2450_s24 + $0x198] sm:$0xff] }
 0x1b6   : > { %v1390_v23 = vrot.slane %v1293_v12, 1  ;;  %v1295_v2 = vld [vmem:[%s2450_s24 + $0x1b0] sm:$0xff]  ;;  %v1297_v19 = vld [vmem:[%s2450_s24 + $0x1c0] sm:$0xff]  ;;  %v1456_v25 = vadd.f32 %v1381_v13, %v1282_v7  ;;  %v1457_v26 = vadd.f32 %v1383_v20, %v1284_v9  ;;  %v1385_v27 = vsel %vm1338_vm2, %v1382_v10, %v1384_v14  ;;  %v1294_v38 = vld [vmem:[%s2450_s24 + $0x1a8] sm:$0xff] }
 0x1b7   : > { %v1387_v22 = vsel %vm1338_vm2, %v1384_v14, %v1386_v16  ;;  %v1299_v29 = vld [vmem:[%s2450_s24 + $0x1d0] sm:$0xff]  ;;  %v1301_v30 = vld [vmem:[%s2450_s24 + $0x1e0] sm:$0xff]  ;;  %1487 = vst [vmem:[%s2083_s5 + $0x98] sm:$0xff] %v1455_v18  ;;  %v1458_v32 = vadd.f32 %v1385_v27, %v1286_v8  ;;  %v1389_v35 = vsel %vm1338_vm2, %v1386_v16, %v1388_v17  ;;  %v1392_v41 = vrot.slane %v1295_v2, 1  ;;  %v1296_v34 = vld [vmem:[%s2450_s24 + $0x1b8] sm:$0xff] }
 0x1b8   : > { %v1303_v24 = vld [vmem:[%s2450_s24 + $0x1f0] sm:$0xff]  ;;  %v1459_v33 = vadd.f32 %v1387_v22, %v1288_v15  ;;  %v1391_v28 = vsel %vm1338_vm2, %v1388_v17, %v1390_v23  ;;  %1488 = vst [vmem:[%s2083_s5 + $0xa0] sm:$0xff] %v1456_v25  ;;  %1489 = vst [vmem:[%s2083_s5 + $0xa8] sm:$0xff] %v1457_v26  ;;  %v1460_v31 = vadd.f32 %v1389_v35, %v1290_v11  ;;  %v1394_v39 = vrot.slane %v1297_v19, 1  ;;  %v1298_v45 = vld [vmem:[%s2450_s24 + $0x1c8] sm:$0xff] }
 0x1b9   : > { %v1461_v37 = vadd.f32 %v1391_v28, %v1292_v21  ;;  %1490 = vst [vmem:[%s2083_s5 + $0xb0] sm:$0xff] %v1458_v32  ;;  %v1396_v40 = vrot.slane %v1299_v29, 1  ;;  %v1300_v36 = vld [vmem:[%s2450_s24 + $0x1d8] sm:$0xff]  ;;  %v1398_v48 = vrot.slane %v1301_v30, 1  ;;  %v1400_v51 = vrot.slane %v1303_v24, 1  ;;  %v1302_v53 = vld [vmem:[%s2450_s24 + $0x1e8] sm:$0xff] }
 0x1ba   : > { %1491 = vst [vmem:[%s2083_s5 + $0xb8] sm:$0xff] %v1459_v33  ;;  %1492 = vst [vmem:[%s2083_s5 + $0xc0] sm:$0xff] %v1460_v31  ;;  %v1393_v43 = vsel %vm1338_vm2, %v1390_v23, %v1392_v41  ;;  %v1395_v46 = vsel %vm1338_vm2, %v1392_v41, %v1394_v39  ;;  %v1304_v54 = vld [vmem:[%s2450_s24 + $0x1f8] sm:$0xff] }
 0x1bb   : > { %1493 = vst [vmem:[%s2083_s5 + $0xc8] sm:$0xff] %v1461_v37  ;;  %v1462_v50 = vadd.f32 %v1393_v43, %v1294_v38  ;;  %v1463_v49 = vadd.f32 %v1395_v46, %v1296_v34  ;;  %v1397_v57 = vsel %vm1338_vm2, %v1394_v39, %v1396_v40  ;;  %v1399_v44 = vsel %vm1338_vm2, %v1396_v40, %v1398_v48 }
 0x1bc   : > { %v1464_v52 = vadd.f32 %v1397_v57, %v1298_v45  ;;  %v1465_v55 = vadd.f32 %v1399_v44, %v1300_v36  ;;  %v1401_v60 = vsel %vm1338_vm2, %v1398_v48, %v1400_v51  ;;  %v1403_v58 = vsel %vm1338_vm2, %v1400_v51, %v1402_v47 }
 0x1bd   : > { %1494 = vst [vmem:[%s2083_s5 + $0xd0] sm:$0xff] %v1462_v50  ;;  %1495 = vst [vmem:[%s2083_s5 + $0xd8] sm:$0xff] %v1463_v49  ;;  %v1466_v63 = vadd.f32 %v1401_v60, %v1302_v53  ;;  %v1467_v61 = vadd.f32 %v1403_v58, %v1304_v54 }
 0x1be   : > { %1496 = vst [vmem:[%s2083_s5 + $0xe0] sm:$0xff] %v1464_v52  ;;  %1497 = vst [vmem:[%s2083_s5 + $0xe8] sm:$0xff] %v1465_v55 }
 0x1bf   : > { %1498 = vst [vmem:[%s2083_s5 + $0xf0] sm:$0xff] %v1466_v63  ;;  %1499 = vst [vmem:[%s2083_s5 + $0xf8] sm:$0xff] %v1467_v61 }
 0x1c0 PF: > { %s12_s13 = sadd.s32 1, %s1987_s13   ;;  %s2601_s9 = smov %s1979_s11 }
 0x1c1   : > { %p9_p12 = scmp.ge.s32.totalorder %s12_s13, 10   ;;  %s2602_s10 = smov %s1983_s12 }
 0x1c2   : > { %s2603_s11 = smov %s2606_s14  ;;  %s2604_s12 = smov %s2610_s15 }
 0x1c3   :  { %11 = sbr.rel (!%p9_p12) target bundleno = 3 (0x3), region = 64 }

</bundles_post_ra>
